<compile_context>
chip_gen: v6e
topology: v6e:2x2x1
jax: 0.10.0
libtpu: 0.0.40
codegen_flags: <defaults>
</compile_context>

<pallas_src>
import functools

import jax
import jax.numpy as jnp
import numpy as np
from jax.experimental import pallas as pl
from jax.experimental.pallas import tpu as pltpu

YOLO_OUT = 24          # B*5 + num_classes = 2*5 + 14 (module-level constant in Loss.py)
NUM_CLASSES = YOLO_OUT - 10

LANE = 128
SUBLANES = 8           # sublanes per tile -> 1024 cells per grid step
INV14 = 1.0 / 14.0


# --------------------------------------- Pallas kernel ---------------------------------------

def yolo_loss_kernel(p_ref, t_ref, out_ref):
    """Per-tile masked partial sums on dense (TS, 128) channel blocks.

    p_ref, t_ref : (24, TS, 128) f32 VMEM tiles (channel, cell-sublane, cell-lane).
    out_ref      : (8, 128) f32 output block (leading grid dim squeezed):
        rows = [n_coo, n_noo, noo_sq, contain_sq, center_sq, hw_sq, not_contain_sq, class_sq]
        each row holds per-lane partial sums (sublane axis reduced in-kernel).
    """
    def p(k):
        return p_ref[k]                   # (TS, 128) dense block, static channel index

    def t(k):
        return t_ref[k]

    # box channels (loaded once, reused)
    px0, py0, pw0, ph0, pc0 = p(0), p(1), p(2), p(3), p(4)
    px1, py1, pw1, ph1, pc1 = p(5), p(6), p(7), p(8), p(9)
    tx0, ty0, tw0, th0, tc0 = t(0), t(1), t(2), t(3), t(4)
    tx1, ty1, tw1, th1, tc1 = t(5), t(6), t(7), t(8), t(9)

    zero = jnp.zeros_like(tc0)
    coo = tc0 > 0.0                       # cell contains an object
    noo = tc0 == 0.0                      # no object (padded cells use conf = -1 -> excluded)

    # --- no-object confidence loss: only channels 4 and 9 of no-object cells ---
    d4 = pc0 - tc0
    d9 = pc1 - tc1
    noo_sq = jnp.where(noo, d4 * d4 + d9 * d9, zero)

    # --- object cells: IoU of the two predicted boxes vs. the (first) target box ---
    def to_xyxy(cx, cy, w, h):            # torch conversion, divide -> hoisted multiply
        cxs = cx * INV14
        cys = cy * INV14
        hw = 0.5 * w
        hh = 0.5 * h
        return (cxs - hw, cys - hh, cxs + hw, cys + hh)

    def iou(a, b):
        ax1, ay1, ax2, ay2 = a
        bx1, by1, bx2, by2 = b
        iw = jnp.maximum(jnp.minimum(ax2, bx2) - jnp.maximum(ax1, bx1), 0.0)
        ih = jnp.maximum(jnp.minimum(ay2, by2) - jnp.maximum(ay1, by1), 0.0)
        inter = iw * ih
        a1 = (ax2 - ax1) * (ay2 - ay1)
        a2 = (bx2 - bx1) * (by2 - by1)
        union = a1 + a2 - inter
        # EUP reciprocal (free slot); degenerate/padded boxes masked out by the select
        return jnp.where(union > 0.0, inter * pl.reciprocal(union, approx=True), zero)

    tb = to_xyxy(tx0, ty0, tw0, th0)
    iou0 = iou(to_xyxy(px0, py0, pw0, ph0), tb)
    iou1 = iou(to_xyxy(px1, py1, pw1, ph1), tb)
    r1 = iou1 > iou0                      # responsible box = box 1 iff strictly larger
    max_iou = jnp.maximum(iou0, iou1)     # ties -> box 0, matching torch's first-max index

    def sel(a, b):                        # pick the responsible box's channel
        return jnp.where(r1, b, a)

    pr_x, pr_y = sel(px0, px1), sel(py0, py1)
    pr_w, pr_h = sel(pw0, pw1), sel(ph0, ph1)
    pr_c = sel(pc0, pc1)
    pnr_c = jnp.where(r1, pc0, pc1)       # non-responsible box confidence (target forced to 0)
    tr_x, tr_y = sel(tx0, tx1), sel(ty0, ty1)
    tr_w, tr_h = sel(tw0, tw1), sel(th0, th1)

    contain_sq = jnp.where(coo, (pr_c - max_iou) ** 2, zero)
    center_sq = jnp.where(coo, (pr_x - tr_x) ** 2 + (pr_y - tr_y) ** 2, zero)
    hw_sq = jnp.where(coo, (pr_w - tr_w) ** 2 + (pr_h - tr_h) ** 2, zero)
    not_contain_sq = jnp.where(coo, pnr_c * pnr_c, zero)

    # --- class loss with label smoothing t*(1-0.1) + 0.1/2; unrolled over the 14 class
    # channels so intermediates stay single (TS,128) blocks ---
    class_sq = zero
    for k in range(10, YOLO_OUT):
        d = p(k) - (t(k) * 0.9 + 0.05)
        class_sq = class_sq + d * d
    class_sq = jnp.where(coo, class_sq, zero)

    # sublane-reduce (XLU) each quantity to a lane vector and store its row directly
    # (no concatenate, no large per-tile output writeback).
    out_ref[0:1, :] = jnp.sum(coo.astype(jnp.float32), axis=0, keepdims=True)
    out_ref[1:2, :] = jnp.sum(noo.astype(jnp.float32), axis=0, keepdims=True)
    out_ref[2:3, :] = jnp.sum(noo_sq, axis=0, keepdims=True)
    out_ref[3:4, :] = jnp.sum(contain_sq, axis=0, keepdims=True)
    out_ref[4:5, :] = jnp.sum(center_sq, axis=0, keepdims=True)
    out_ref[5:6, :] = jnp.sum(hw_sq, axis=0, keepdims=True)
    out_ref[6:7, :] = jnp.sum(not_contain_sq, axis=0, keepdims=True)
    out_ref[7:8, :] = jnp.sum(class_sq, axis=0, keepdims=True)


# ----------------------------------------- wrapper -------------------------------------------

@functools.partial(jax.jit, static_argnames=("S", "B", "l_coord", "l_noobj"))
def yolo_loss(pred, target, *, S, B, l_coord, l_noobj):
    # inputs are channels-last (N, S, S, 24) like the torch module; the kernel works on a
    # feature-major (24, T, 128) view so cells are dense over (sublane, lane).
    N = pred.shape[0]
    F = pred.shape[-1]
    assert F == YOLO_OUT and B == 2, "kernel is specialized to B=2 boxes, 24 channels"
    C = N * S * S

    T = -(-C // LANE)                      # number of 128-lane cell groups
    if T >= SUBLANES:
        TS = SUBLANES                      # 8 sublanes x 128 lanes = 1024 cells / grid step
        T_pad = -(-T // TS) * TS
    else:
        TS = T                             # tiny inputs: single block equal to full dims
        T_pad = T
    num_tiles = T_pad // TS
    C_pad = T_pad * LANE

    # layout plumbing (small tensor): cast + transpose + pad fuse into one XLA copy.
    p = pred.reshape(C, F).astype(jnp.float32).T       # (24, C)
    t = target.reshape(C, F).astype(jnp.float32).T
    pad = C_pad - C
    if pad:
        p = jnp.pad(p, ((0, 0), (0, pad)))
        # padded cells get target confidence -1: neither "object" (>0) nor "no-object" (==0),
        # so they contribute nothing to any partial sum.
        t = jnp.pad(t, ((0, 0), (0, pad)), constant_values=-1.0)
    p = p.reshape(F, T_pad, LANE)
    t = t.reshape(F, T_pad, LANE)

    partials = pl.pallas_call(
        yolo_loss_kernel,
        out_shape=jax.ShapeDtypeStruct((num_tiles, 8, LANE), jnp.float32),
        grid_spec=pltpu.PrefetchScalarGridSpec(
            num_scalar_prefetch=0,
            grid=(num_tiles,),
            in_specs=[
                pl.BlockSpec((F, TS, LANE), lambda i: (0, i, 0)),
                pl.BlockSpec((F, TS, LANE), lambda i: (0, i, 0)),
            ],
            out_specs=pl.BlockSpec((None, 8, LANE), lambda i: (i, 0, 0)),
        ),
        compiler_params=pltpu.CompilerParams(dimension_semantics=("parallel",)),
    )(p, t)

    # tiny reduction: (num_tiles, 8, 128) -> (8,); padded lanes are exact zeros.
    sums = jnp.sum(partials, axis=(0, 2))

    n_coo = sums[0]
    n_noo = sums[1]
    noo_sq, contain_sq, center_sq, hw_sq, notc_sq, class_sq = (
        sums[2], sums[3], sums[4], sums[5], sums[6], sums[7]
    )

    # F.mse_loss(..., size_average=None) == mean reduction -> sum / element_count.
    # Precondition (same as torch): at least one object cell and one no-object cell,
    # otherwise the empty-mean divides produce NaN in both implementations.
    nooobj_loss = noo_sq / (2.0 * n_noo)              # 2 confidence channels per no-obj cell
    contain_loss = contain_sq / n_coo
    loc_loss = (center_sq + hw_sq) / (2.0 * n_coo)    # center_loss + hw_loss, each over 2*Ncoo
    not_contain_loss = notc_sq / n_coo
    class_loss = class_sq / (float(NUM_CLASSES) * n_coo)

    return (l_coord * loc_loss + 2.0 * contain_loss + not_contain_loss
            + l_noobj * nooobj_loss + class_loss) / N


# ------------------------------ numpy reference (follows torch code) -------------------------

def yolo_loss_ref(pred, target, S, B, l_coord, l_noobj):
    N = pred.shape[0]
    F = pred.shape[-1]
    p = np.asarray(pred, np.float64).reshape(-1, F)
    t = np.asarray(target, np.float64).reshape(-1, F)
    coo = t[:, 4] > 0
    noo = t[:, 4] == 0

    coo_pred = p[coo]
    coo_tgt = t[coo]
    box_pred = coo_pred[:, :10].reshape(-1, 5)
    box_tgt = coo_tgt[:, :10].reshape(-1, 5)
    class_pred = coo_pred[:, 10:]
    class_tgt = coo_tgt[:, 10:] * 0.9 + 0.05

    noo_pred = p[noo]
    noo_tgt = t[noo]
    nooobj_loss = np.mean((noo_pred[:, [4, 9]] - noo_tgt[:, [4, 9]]) ** 2)

    def to_xyxy(b):
        out = np.zeros((b.shape[0], 4))
        out[:, 0] = b[:, 0] / 14.0 - 0.5 * b[:, 2]
        out[:, 1] = b[:, 1] / 14.0 - 0.5 * b[:, 3]
        out[:, 2] = b[:, 0] / 14.0 + 0.5 * b[:, 2]
        out[:, 3] = b[:, 1] / 14.0 + 0.5 * b[:, 3]
        return out

    def iou(a, b):
        lt = np.maximum(a[:, None, :2], b[None, :, :2])
        rb = np.minimum(a[:, None, 2:], b[None, :, 2:])
        wh = np.clip(rb - lt, 0, None)
        inter = wh[..., 0] * wh[..., 1]
        a1 = (a[:, 2] - a[:, 0]) * (a[:, 3] - a[:, 1])
        a2 = (b[:, 2] - b[:, 0]) * (b[:, 3] - b[:, 1])
        return inter / (a1[:, None] + a2[None, :] - inter)

    contain, center, hw, notc = [], [], [], []
    for c in range(box_pred.shape[0] // 2):
        i = 2 * c
        io = iou(to_xyxy(box_pred[i:i + 2]), to_xyxy(box_tgt[i:i + 1]))[:, 0]
        r = int(np.argmax(io))
        max_iou = io[r]
        pr, tr, pnr = box_pred[i + r], box_tgt[i + r], box_pred[i + 1 - r]
        contain.append((pr[4] - max_iou) ** 2)
        center += [(pr[0] - tr[0]) ** 2, (pr[1] - tr[1]) ** 2]
        hw += [(pr[2] - tr[2]) ** 2, (pr[3] - tr[3]) ** 2]
        notc.append(pnr[4] ** 2)

    contain_loss = np.mean(contain)
    loc_loss = np.mean(center) + np.mean(hw)
    not_contain_loss = np.mean(notc)
    class_loss = np.mean((class_pred - class_tgt) ** 2)
    return (l_coord * loc_loss + 2 * contain_loss + not_contain_loss
            + l_noobj * nooobj_loss + class_loss) / N


# ------------------------------------------- main --------------------------------------------

if __name__ == "__main__":
    S, B = 7, 2
    l_coord, l_noobj = 5.0, 0.5
    N = 2

    key = jax.random.PRNGKey(0)
    k1, k2, k3 = jax.random.split(key, 3)
    pred = jax.random.uniform(k1, (N, S, S, YOLO_OUT), dtype=jnp.float32)
    target = jax.random.uniform(k2, (N, S, S, YOLO_OUT), dtype=jnp.float32)
    conf = (jax.random.uniform(k3, (N, S, S)) < 0.3).astype(jnp.float32)
    target = target.at[..., 4].set(conf)
    target = target.at[..., 9].set(conf)

    loss = yolo_loss(pred, target, S=S, B=B, l_coord=l_coord, l_noobj=l_noobj)
    loss = jax.block_until_ready(loss)

    ref = yolo_loss_ref(np.asarray(pred), np.asarray(target), S, B, l_coord, l_noobj)
    np.testing.assert_allclose(float(loss), float(ref), rtol=2e-3, atol=1e-4)

    # Robustness check: zero the target boxes in no-object cells (the natural YOLO target
    # format).  Those channels never enter the torch loss, so the result must be finite and
    # unchanged (exercises the degenerate-box / approx-reciprocal NaN guards).
    noo = conf == 0.0
    t0 = target
    for ch in (0, 1, 2, 3, 5, 6, 7, 8):
        t0 = t0.at[..., ch].set(jnp.where(noo, 0.0, t0[..., ch]))
    loss0 = jax.block_until_ready(
        yolo_loss(pred, t0, S=S, B=B, l_coord=l_coord, l_noobj=l_noobj))
    assert np.isfinite(float(loss0))
    np.testing.assert_allclose(float(loss0), float(ref), rtol=2e-3, atol=1e-4)

    print("KERNEL_OK")
</pallas_src>

<mosaic_0001>
module attributes {stable_mosaic.version = 11 : i64} {
  func.func @yolo_loss_kernel(%arg0: i32, %arg1: memref<24x1x128xf32, #tpu.memory_space<vmem>>, %arg2: memref<24x1x128xf32, #tpu.memory_space<vmem>>, %arg3: memref<1x8x128xf32, #tpu.memory_space<vmem>>) attributes {dimension_semantics = [#tpu.dimension_semantics<parallel>], iteration_bounds = array<i64: 1>, scalar_prefetch = 0 : i64, scratch_operands = 0 : i64, tpu.core_type = #tpu.core_type<tc>, window_params = [{transform_indices = @transform_0, window_bounds = array<i64: 24, 1, 128>}, {transform_indices = @transform_1, window_bounds = array<i64: 24, 1, 128>}, {transform_indices = @transform_2, window_bounds = array<i64: 1, 8, 128>}]} {
    %c0 = arith.constant 0 : index
    %c0_0 = arith.constant 0 : index
    %c0_1 = arith.constant 0 : index
    %0 = vector.load %arg1[%c0, %c0_0, %c0_1] : memref<24x1x128xf32, #tpu.memory_space<vmem>>, vector<1x1x128xf32>
    %1 = vector.shape_cast %0 : vector<1x1x128xf32> to vector<1x128xf32>
    %c1 = arith.constant 1 : index
    %c0_2 = arith.constant 0 : index
    %c0_3 = arith.constant 0 : index
    %2 = vector.load %arg1[%c1, %c0_2, %c0_3] : memref<24x1x128xf32, #tpu.memory_space<vmem>>, vector<1x1x128xf32>
    %3 = vector.shape_cast %2 : vector<1x1x128xf32> to vector<1x128xf32>
    %c2 = arith.constant 2 : index
    %c0_4 = arith.constant 0 : index
    %c0_5 = arith.constant 0 : index
    %4 = vector.load %arg1[%c2, %c0_4, %c0_5] : memref<24x1x128xf32, #tpu.memory_space<vmem>>, vector<1x1x128xf32>
    %5 = vector.shape_cast %4 : vector<1x1x128xf32> to vector<1x128xf32>
    %c3 = arith.constant 3 : index
    %c0_6 = arith.constant 0 : index
    %c0_7 = arith.constant 0 : index
    %6 = vector.load %arg1[%c3, %c0_6, %c0_7] : memref<24x1x128xf32, #tpu.memory_space<vmem>>, vector<1x1x128xf32>
    %7 = vector.shape_cast %6 : vector<1x1x128xf32> to vector<1x128xf32>
    %c4 = arith.constant 4 : index
    %c0_8 = arith.constant 0 : index
    %c0_9 = arith.constant 0 : index
    %8 = vector.load %arg1[%c4, %c0_8, %c0_9] : memref<24x1x128xf32, #tpu.memory_space<vmem>>, vector<1x1x128xf32>
    %9 = vector.shape_cast %8 : vector<1x1x128xf32> to vector<1x128xf32>
    %c5 = arith.constant 5 : index
    %c0_10 = arith.constant 0 : index
    %c0_11 = arith.constant 0 : index
    %10 = vector.load %arg1[%c5, %c0_10, %c0_11] : memref<24x1x128xf32, #tpu.memory_space<vmem>>, vector<1x1x128xf32>
    %11 = vector.shape_cast %10 : vector<1x1x128xf32> to vector<1x128xf32>
    %c6 = arith.constant 6 : index
    %c0_12 = arith.constant 0 : index
    %c0_13 = arith.constant 0 : index
    %12 = vector.load %arg1[%c6, %c0_12, %c0_13] : memref<24x1x128xf32, #tpu.memory_space<vmem>>, vector<1x1x128xf32>
    %13 = vector.shape_cast %12 : vector<1x1x128xf32> to vector<1x128xf32>
    %c7 = arith.constant 7 : index
    %c0_14 = arith.constant 0 : index
    %c0_15 = arith.constant 0 : index
    %14 = vector.load %arg1[%c7, %c0_14, %c0_15] : memref<24x1x128xf32, #tpu.memory_space<vmem>>, vector<1x1x128xf32>
    %15 = vector.shape_cast %14 : vector<1x1x128xf32> to vector<1x128xf32>
    %c8 = arith.constant 8 : index
    %c0_16 = arith.constant 0 : index
    %c0_17 = arith.constant 0 : index
    %16 = vector.load %arg1[%c8, %c0_16, %c0_17] : memref<24x1x128xf32, #tpu.memory_space<vmem>>, vector<1x1x128xf32>
    %17 = vector.shape_cast %16 : vector<1x1x128xf32> to vector<1x128xf32>
    %c9 = arith.constant 9 : index
    %c0_18 = arith.constant 0 : index
    %c0_19 = arith.constant 0 : index
    %18 = vector.load %arg1[%c9, %c0_18, %c0_19] : memref<24x1x128xf32, #tpu.memory_space<vmem>>, vector<1x1x128xf32>
    %19 = vector.shape_cast %18 : vector<1x1x128xf32> to vector<1x128xf32>
    %c0_20 = arith.constant 0 : index
    %c0_21 = arith.constant 0 : index
    %c0_22 = arith.constant 0 : index
    %20 = vector.load %arg2[%c0_20, %c0_21, %c0_22] : memref<24x1x128xf32, #tpu.memory_space<vmem>>, vector<1x1x128xf32>
    %21 = vector.shape_cast %20 : vector<1x1x128xf32> to vector<1x128xf32>
    %c1_23 = arith.constant 1 : index
    %c0_24 = arith.constant 0 : index
    %c0_25 = arith.constant 0 : index
    %22 = vector.load %arg2[%c1_23, %c0_24, %c0_25] : memref<24x1x128xf32, #tpu.memory_space<vmem>>, vector<1x1x128xf32>
    %23 = vector.shape_cast %22 : vector<1x1x128xf32> to vector<1x128xf32>
    %c2_26 = arith.constant 2 : index
    %c0_27 = arith.constant 0 : index
    %c0_28 = arith.constant 0 : index
    %24 = vector.load %arg2[%c2_26, %c0_27, %c0_28] : memref<24x1x128xf32, #tpu.memory_space<vmem>>, vector<1x1x128xf32>
    %25 = vector.shape_cast %24 : vector<1x1x128xf32> to vector<1x128xf32>
    %c3_29 = arith.constant 3 : index
    %c0_30 = arith.constant 0 : index
    %c0_31 = arith.constant 0 : index
    %26 = vector.load %arg2[%c3_29, %c0_30, %c0_31] : memref<24x1x128xf32, #tpu.memory_space<vmem>>, vector<1x1x128xf32>
    %27 = vector.shape_cast %26 : vector<1x1x128xf32> to vector<1x128xf32>
    %c4_32 = arith.constant 4 : index
    %c0_33 = arith.constant 0 : index
    %c0_34 = arith.constant 0 : index
    %28 = vector.load %arg2[%c4_32, %c0_33, %c0_34] : memref<24x1x128xf32, #tpu.memory_space<vmem>>, vector<1x1x128xf32>
    %29 = vector.shape_cast %28 : vector<1x1x128xf32> to vector<1x128xf32>
    %c5_35 = arith.constant 5 : index
    %c0_36 = arith.constant 0 : index
    %c0_37 = arith.constant 0 : index
    %30 = vector.load %arg2[%c5_35, %c0_36, %c0_37] : memref<24x1x128xf32, #tpu.memory_space<vmem>>, vector<1x1x128xf32>
    %31 = vector.shape_cast %30 : vector<1x1x128xf32> to vector<1x128xf32>
    %c6_38 = arith.constant 6 : index
    %c0_39 = arith.constant 0 : index
    %c0_40 = arith.constant 0 : index
    %32 = vector.load %arg2[%c6_38, %c0_39, %c0_40] : memref<24x1x128xf32, #tpu.memory_space<vmem>>, vector<1x1x128xf32>
    %33 = vector.shape_cast %32 : vector<1x1x128xf32> to vector<1x128xf32>
    %c7_41 = arith.constant 7 : index
    %c0_42 = arith.constant 0 : index
    %c0_43 = arith.constant 0 : index
    %34 = vector.load %arg2[%c7_41, %c0_42, %c0_43] : memref<24x1x128xf32, #tpu.memory_space<vmem>>, vector<1x1x128xf32>
    %35 = vector.shape_cast %34 : vector<1x1x128xf32> to vector<1x128xf32>
    %c8_44 = arith.constant 8 : index
    %c0_45 = arith.constant 0 : index
    %c0_46 = arith.constant 0 : index
    %36 = vector.load %arg2[%c8_44, %c0_45, %c0_46] : memref<24x1x128xf32, #tpu.memory_space<vmem>>, vector<1x1x128xf32>
    %37 = vector.shape_cast %36 : vector<1x1x128xf32> to vector<1x128xf32>
    %c9_47 = arith.constant 9 : index
    %c0_48 = arith.constant 0 : index
    %c0_49 = arith.constant 0 : index
    %38 = vector.load %arg2[%c9_47, %c0_48, %c0_49] : memref<24x1x128xf32, #tpu.memory_space<vmem>>, vector<1x1x128xf32>
    %39 = vector.shape_cast %38 : vector<1x1x128xf32> to vector<1x128xf32>
    %cst = arith.constant 0.000000e+00 : f32
    %40 = vector.broadcast %cst : f32 to vector<1x128xf32>
    %cst_50 = arith.constant 0.000000e+00 : f32
    %41 = vector.broadcast %cst_50 : f32 to vector<1x128xf32>
    %42 = arith.cmpf ogt, %29, %41 : vector<1x128xf32>
    %cst_51 = arith.constant 0.000000e+00 : f32
    %43 = vector.broadcast %cst_51 : f32 to vector<1x128xf32>
    %44 = arith.cmpf oeq, %29, %43 : vector<1x128xf32>
    %45 = arith.subf %9, %29 : vector<1x128xf32>
    %46 = arith.subf %19, %39 : vector<1x128xf32>
    %47 = arith.mulf %45, %45 : vector<1x128xf32>
    %48 = arith.mulf %46, %46 : vector<1x128xf32>
    %49 = arith.addf %47, %48 : vector<1x128xf32>
    %50 = arith.select %44, %49, %40 : vector<1x128xi1>, vector<1x128xf32>
    %cst_52 = arith.constant 0.0714285746 : f32
    %51 = vector.broadcast %cst_52 : f32 to vector<1x128xf32>
    %52 = arith.mulf %21, %51 : vector<1x128xf32>
    %cst_53 = arith.constant 0.0714285746 : f32
    %53 = vector.broadcast %cst_53 : f32 to vector<1x128xf32>
    %54 = arith.mulf %23, %53 : vector<1x128xf32>
    %cst_54 = arith.constant 5.000000e-01 : f32
    %55 = vector.broadcast %cst_54 : f32 to vector<1x128xf32>
    %56 = arith.mulf %55, %25 : vector<1x128xf32>
    %cst_55 = arith.constant 5.000000e-01 : f32
    %57 = vector.broadcast %cst_55 : f32 to vector<1x128xf32>
    %58 = arith.mulf %57, %27 : vector<1x128xf32>
    %59 = arith.subf %52, %56 : vector<1x128xf32>
    %60 = arith.subf %54, %58 : vector<1x128xf32>
    %61 = arith.addf %52, %56 : vector<1x128xf32>
    %62 = arith.addf %54, %58 : vector<1x128xf32>
    %cst_56 = arith.constant 0.0714285746 : f32
    %63 = vector.broadcast %cst_56 : f32 to vector<1x128xf32>
    %64 = arith.mulf %1, %63 : vector<1x128xf32>
    %cst_57 = arith.constant 0.0714285746 : f32
    %65 = vector.broadcast %cst_57 : f32 to vector<1x128xf32>
    %66 = arith.mulf %3, %65 : vector<1x128xf32>
    %cst_58 = arith.constant 5.000000e-01 : f32
    %67 = vector.broadcast %cst_58 : f32 to vector<1x128xf32>
    %68 = arith.mulf %67, %5 : vector<1x128xf32>
    %cst_59 = arith.constant 5.000000e-01 : f32
    %69 = vector.broadcast %cst_59 : f32 to vector<1x128xf32>
    %70 = arith.mulf %69, %7 : vector<1x128xf32>
    %71 = arith.subf %64, %68 : vector<1x128xf32>
    %72 = arith.subf %66, %70 : vector<1x128xf32>
    %73 = arith.addf %64, %68 : vector<1x128xf32>
    %74 = arith.addf %66, %70 : vector<1x128xf32>
    %75 = arith.minimumf %73, %61 : vector<1x128xf32>
    %76 = arith.maximumf %71, %59 : vector<1x128xf32>
    %77 = arith.subf %75, %76 : vector<1x128xf32>
    %cst_60 = arith.constant 0.000000e+00 : f32
    %78 = vector.broadcast %cst_60 : f32 to vector<1x128xf32>
    %79 = arith.maximumf %77, %78 : vector<1x128xf32>
    %80 = arith.minimumf %74, %62 : vector<1x128xf32>
    %81 = arith.maximumf %72, %60 : vector<1x128xf32>
    %82 = arith.subf %80, %81 : vector<1x128xf32>
    %cst_61 = arith.constant 0.000000e+00 : f32
    %83 = vector.broadcast %cst_61 : f32 to vector<1x128xf32>
    %84 = arith.maximumf %82, %83 : vector<1x128xf32>
    %85 = arith.mulf %79, %84 : vector<1x128xf32>
    %86 = arith.subf %73, %71 : vector<1x128xf32>
    %87 = arith.subf %74, %72 : vector<1x128xf32>
    %88 = arith.mulf %86, %87 : vector<1x128xf32>
    %89 = arith.subf %61, %59 : vector<1x128xf32>
    %90 = arith.subf %62, %60 : vector<1x128xf32>
    %91 = arith.mulf %89, %90 : vector<1x128xf32>
    %92 = arith.addf %88, %91 : vector<1x128xf32>
    %93 = arith.subf %92, %85 : vector<1x128xf32>
    %cst_62 = arith.constant 0.000000e+00 : f32
    %94 = vector.broadcast %cst_62 : f32 to vector<1x128xf32>
    %95 = arith.cmpf ogt, %93, %94 : vector<1x128xf32>
    %96 = tpu.reciprocal %93 {approx = true} : vector<1x128xf32> -> vector<1x128xf32>
    %97 = arith.mulf %85, %96 : vector<1x128xf32>
    %98 = arith.select %95, %97, %40 : vector<1x128xi1>, vector<1x128xf32>
    %cst_63 = arith.constant 0.0714285746 : f32
    %99 = vector.broadcast %cst_63 : f32 to vector<1x128xf32>
    %100 = arith.mulf %11, %99 : vector<1x128xf32>
    %cst_64 = arith.constant 0.0714285746 : f32
    %101 = vector.broadcast %cst_64 : f32 to vector<1x128xf32>
    %102 = arith.mulf %13, %101 : vector<1x128xf32>
    %cst_65 = arith.constant 5.000000e-01 : f32
    %103 = vector.broadcast %cst_65 : f32 to vector<1x128xf32>
    %104 = arith.mulf %103, %15 : vector<1x128xf32>
    %cst_66 = arith.constant 5.000000e-01 : f32
    %105 = vector.broadcast %cst_66 : f32 to vector<1x128xf32>
    %106 = arith.mulf %105, %17 : vector<1x128xf32>
    %107 = arith.subf %100, %104 : vector<1x128xf32>
    %108 = arith.subf %102, %106 : vector<1x128xf32>
    %109 = arith.addf %100, %104 : vector<1x128xf32>
    %110 = arith.addf %102, %106 : vector<1x128xf32>
    %111 = arith.minimumf %109, %61 : vector<1x128xf32>
    %112 = arith.maximumf %107, %59 : vector<1x128xf32>
    %113 = arith.subf %111, %112 : vector<1x128xf32>
    %cst_67 = arith.constant 0.000000e+00 : f32
    %114 = vector.broadcast %cst_67 : f32 to vector<1x128xf32>
    %115 = arith.maximumf %113, %114 : vector<1x128xf32>
    %116 = arith.minimumf %110, %62 : vector<1x128xf32>
    %117 = arith.maximumf %108, %60 : vector<1x128xf32>
    %118 = arith.subf %116, %117 : vector<1x128xf32>
    %cst_68 = arith.constant 0.000000e+00 : f32
    %119 = vector.broadcast %cst_68 : f32 to vector<1x128xf32>
    %120 = arith.maximumf %118, %119 : vector<1x128xf32>
    %121 = arith.mulf %115, %120 : vector<1x128xf32>
    %122 = arith.subf %109, %107 : vector<1x128xf32>
    %123 = arith.subf %110, %108 : vector<1x128xf32>
    %124 = arith.mulf %122, %123 : vector<1x128xf32>
    %125 = arith.subf %61, %59 : vector<1x128xf32>
    %126 = arith.subf %62, %60 : vector<1x128xf32>
    %127 = arith.mulf %125, %126 : vector<1x128xf32>
    %128 = arith.addf %124, %127 : vector<1x128xf32>
    %129 = arith.subf %128, %121 : vector<1x128xf32>
    %cst_69 = arith.constant 0.000000e+00 : f32
    %130 = vector.broadcast %cst_69 : f32 to vector<1x128xf32>
    %131 = arith.cmpf ogt, %129, %130 : vector<1x128xf32>
    %132 = tpu.reciprocal %129 {approx = true} : vector<1x128xf32> -> vector<1x128xf32>
    %133 = arith.mulf %121, %132 : vector<1x128xf32>
    %134 = arith.select %131, %133, %40 : vector<1x128xi1>, vector<1x128xf32>
    %135 = arith.cmpf ogt, %134, %98 : vector<1x128xf32>
    %136 = arith.maximumf %98, %134 : vector<1x128xf32>
    %137 = arith.select %135, %11, %1 : vector<1x128xi1>, vector<1x128xf32>
    %138 = arith.select %135, %13, %3 : vector<1x128xi1>, vector<1x128xf32>
    %139 = arith.select %135, %15, %5 : vector<1x128xi1>, vector<1x128xf32>
    %140 = arith.select %135, %17, %7 : vector<1x128xi1>, vector<1x128xf32>
    %141 = arith.select %135, %19, %9 : vector<1x128xi1>, vector<1x128xf32>
    %142 = arith.select %135, %9, %19 : vector<1x128xi1>, vector<1x128xf32>
    %143 = arith.select %135, %31, %21 : vector<1x128xi1>, vector<1x128xf32>
    %144 = arith.select %135, %33, %23 : vector<1x128xi1>, vector<1x128xf32>
    %145 = arith.select %135, %35, %25 : vector<1x128xi1>, vector<1x128xf32>
    %146 = arith.select %135, %37, %27 : vector<1x128xi1>, vector<1x128xf32>
    %147 = arith.subf %141, %136 : vector<1x128xf32>
    %148 = arith.mulf %147, %147 : vector<1x128xf32>
    %149 = arith.select %42, %148, %40 : vector<1x128xi1>, vector<1x128xf32>
    %150 = arith.subf %137, %143 : vector<1x128xf32>
    %151 = arith.mulf %150, %150 : vector<1x128xf32>
    %152 = arith.subf %138, %144 : vector<1x128xf32>
    %153 = arith.mulf %152, %152 : vector<1x128xf32>
    %154 = arith.addf %151, %153 : vector<1x128xf32>
    %155 = arith.select %42, %154, %40 : vector<1x128xi1>, vector<1x128xf32>
    %156 = arith.subf %139, %145 : vector<1x128xf32>
    %157 = arith.mulf %156, %156 : vector<1x128xf32>
    %158 = arith.subf %140, %146 : vector<1x128xf32>
    %159 = arith.mulf %158, %158 : vector<1x128xf32>
    %160 = arith.addf %157, %159 : vector<1x128xf32>
    %161 = arith.select %42, %160, %40 : vector<1x128xi1>, vector<1x128xf32>
    %162 = arith.mulf %142, %142 : vector<1x128xf32>
    %163 = arith.select %42, %162, %40 : vector<1x128xi1>, vector<1x128xf32>
    %c10 = arith.constant 10 : index
    %c0_70 = arith.constant 0 : index
    %c0_71 = arith.constant 0 : index
    %164 = vector.load %arg1[%c10, %c0_70, %c0_71] : memref<24x1x128xf32, #tpu.memory_space<vmem>>, vector<1x1x128xf32>
    %165 = vector.shape_cast %164 : vector<1x1x128xf32> to vector<1x128xf32>
    %c10_72 = arith.constant 10 : index
    %c0_73 = arith.constant 0 : index
    %c0_74 = arith.constant 0 : index
    %166 = vector.load %arg2[%c10_72, %c0_73, %c0_74] : memref<24x1x128xf32, #tpu.memory_space<vmem>>, vector<1x1x128xf32>
    %167 = vector.shape_cast %166 : vector<1x1x128xf32> to vector<1x128xf32>
    %cst_75 = arith.constant 0.899999976 : f32
    %168 = vector.broadcast %cst_75 : f32 to vector<1x128xf32>
    %169 = arith.mulf %167, %168 : vector<1x128xf32>
    %cst_76 = arith.constant 5.000000e-02 : f32
    %170 = vector.broadcast %cst_76 : f32 to vector<1x128xf32>
    %171 = arith.addf %169, %170 : vector<1x128xf32>
    %172 = arith.subf %165, %171 : vector<1x128xf32>
    %173 = arith.mulf %172, %172 : vector<1x128xf32>
    %174 = arith.addf %40, %173 : vector<1x128xf32>
    %c11 = arith.constant 11 : index
    %c0_77 = arith.constant 0 : index
    %c0_78 = arith.constant 0 : index
    %175 = vector.load %arg1[%c11, %c0_77, %c0_78] : memref<24x1x128xf32, #tpu.memory_space<vmem>>, vector<1x1x128xf32>
    %176 = vector.shape_cast %175 : vector<1x1x128xf32> to vector<1x128xf32>
    %c11_79 = arith.constant 11 : index
    %c0_80 = arith.constant 0 : index
    %c0_81 = arith.constant 0 : index
    %177 = vector.load %arg2[%c11_79, %c0_80, %c0_81] : memref<24x1x128xf32, #tpu.memory_space<vmem>>, vector<1x1x128xf32>
    %178 = vector.shape_cast %177 : vector<1x1x128xf32> to vector<1x128xf32>
    %cst_82 = arith.constant 0.899999976 : f32
    %179 = vector.broadcast %cst_82 : f32 to vector<1x128xf32>
    %180 = arith.mulf %178, %179 : vector<1x128xf32>
    %cst_83 = arith.constant 5.000000e-02 : f32
    %181 = vector.broadcast %cst_83 : f32 to vector<1x128xf32>
    %182 = arith.addf %180, %181 : vector<1x128xf32>
    %183 = arith.subf %176, %182 : vector<1x128xf32>
    %184 = arith.mulf %183, %183 : vector<1x128xf32>
    %185 = arith.addf %174, %184 : vector<1x128xf32>
    %c12 = arith.constant 12 : index
    %c0_84 = arith.constant 0 : index
    %c0_85 = arith.constant 0 : index
    %186 = vector.load %arg1[%c12, %c0_84, %c0_85] : memref<24x1x128xf32, #tpu.memory_space<vmem>>, vector<1x1x128xf32>
    %187 = vector.shape_cast %186 : vector<1x1x128xf32> to vector<1x128xf32>
    %c12_86 = arith.constant 12 : index
    %c0_87 = arith.constant 0 : index
    %c0_88 = arith.constant 0 : index
    %188 = vector.load %arg2[%c12_86, %c0_87, %c0_88] : memref<24x1x128xf32, #tpu.memory_space<vmem>>, vector<1x1x128xf32>
    %189 = vector.shape_cast %188 : vector<1x1x128xf32> to vector<1x128xf32>
    %cst_89 = arith.constant 0.899999976 : f32
    %190 = vector.broadcast %cst_89 : f32 to vector<1x128xf32>
    %191 = arith.mulf %189, %190 : vector<1x128xf32>
    %cst_90 = arith.constant 5.000000e-02 : f32
    %192 = vector.broadcast %cst_90 : f32 to vector<1x128xf32>
    %193 = arith.addf %191, %192 : vector<1x128xf32>
    %194 = arith.subf %187, %193 : vector<1x128xf32>
    %195 = arith.mulf %194, %194 : vector<1x128xf32>
    %196 = arith.addf %185, %195 : vector<1x128xf32>
    %c13 = arith.constant 13 : index
    %c0_91 = arith.constant 0 : index
    %c0_92 = arith.constant 0 : index
    %197 = vector.load %arg1[%c13, %c0_91, %c0_92] : memref<24x1x128xf32, #tpu.memory_space<vmem>>, vector<1x1x128xf32>
    %198 = vector.shape_cast %197 : vector<1x1x128xf32> to vector<1x128xf32>
    %c13_93 = arith.constant 13 : index
    %c0_94 = arith.constant 0 : index
    %c0_95 = arith.constant 0 : index
    %199 = vector.load %arg2[%c13_93, %c0_94, %c0_95] : memref<24x1x128xf32, #tpu.memory_space<vmem>>, vector<1x1x128xf32>
    %200 = vector.shape_cast %199 : vector<1x1x128xf32> to vector<1x128xf32>
    %cst_96 = arith.constant 0.899999976 : f32
    %201 = vector.broadcast %cst_96 : f32 to vector<1x128xf32>
    %202 = arith.mulf %200, %201 : vector<1x128xf32>
    %cst_97 = arith.constant 5.000000e-02 : f32
    %203 = vector.broadcast %cst_97 : f32 to vector<1x128xf32>
    %204 = arith.addf %202, %203 : vector<1x128xf32>
    %205 = arith.subf %198, %204 : vector<1x128xf32>
    %206 = arith.mulf %205, %205 : vector<1x128xf32>
    %207 = arith.addf %196, %206 : vector<1x128xf32>
    %c14 = arith.constant 14 : index
    %c0_98 = arith.constant 0 : index
    %c0_99 = arith.constant 0 : index
    %208 = vector.load %arg1[%c14, %c0_98, %c0_99] : memref<24x1x128xf32, #tpu.memory_space<vmem>>, vector<1x1x128xf32>
    %209 = vector.shape_cast %208 : vector<1x1x128xf32> to vector<1x128xf32>
    %c14_100 = arith.constant 14 : index
    %c0_101 = arith.constant 0 : index
    %c0_102 = arith.constant 0 : index
    %210 = vector.load %arg2[%c14_100, %c0_101, %c0_102] : memref<24x1x128xf32, #tpu.memory_space<vmem>>, vector<1x1x128xf32>
    %211 = vector.shape_cast %210 : vector<1x1x128xf32> to vector<1x128xf32>
    %cst_103 = arith.constant 0.899999976 : f32
    %212 = vector.broadcast %cst_103 : f32 to vector<1x128xf32>
    %213 = arith.mulf %211, %212 : vector<1x128xf32>
    %cst_104 = arith.constant 5.000000e-02 : f32
    %214 = vector.broadcast %cst_104 : f32 to vector<1x128xf32>
    %215 = arith.addf %213, %214 : vector<1x128xf32>
    %216 = arith.subf %209, %215 : vector<1x128xf32>
    %217 = arith.mulf %216, %216 : vector<1x128xf32>
    %218 = arith.addf %207, %217 : vector<1x128xf32>
    %c15 = arith.constant 15 : index
    %c0_105 = arith.constant 0 : index
    %c0_106 = arith.constant 0 : index
    %219 = vector.load %arg1[%c15, %c0_105, %c0_106] : memref<24x1x128xf32, #tpu.memory_space<vmem>>, vector<1x1x128xf32>
    %220 = vector.shape_cast %219 : vector<1x1x128xf32> to vector<1x128xf32>
    %c15_107 = arith.constant 15 : index
    %c0_108 = arith.constant 0 : index
    %c0_109 = arith.constant 0 : index
    %221 = vector.load %arg2[%c15_107, %c0_108, %c0_109] : memref<24x1x128xf32, #tpu.memory_space<vmem>>, vector<1x1x128xf32>
    %222 = vector.shape_cast %221 : vector<1x1x128xf32> to vector<1x128xf32>
    %cst_110 = arith.constant 0.899999976 : f32
    %223 = vector.broadcast %cst_110 : f32 to vector<1x128xf32>
    %224 = arith.mulf %222, %223 : vector<1x128xf32>
    %cst_111 = arith.constant 5.000000e-02 : f32
    %225 = vector.broadcast %cst_111 : f32 to vector<1x128xf32>
    %226 = arith.addf %224, %225 : vector<1x128xf32>
    %227 = arith.subf %220, %226 : vector<1x128xf32>
    %228 = arith.mulf %227, %227 : vector<1x128xf32>
    %229 = arith.addf %218, %228 : vector<1x128xf32>
    %c16 = arith.constant 16 : index
    %c0_112 = arith.constant 0 : index
    %c0_113 = arith.constant 0 : index
    %230 = vector.load %arg1[%c16, %c0_112, %c0_113] : memref<24x1x128xf32, #tpu.memory_space<vmem>>, vector<1x1x128xf32>
    %231 = vector.shape_cast %230 : vector<1x1x128xf32> to vector<1x128xf32>
    %c16_114 = arith.constant 16 : index
    %c0_115 = arith.constant 0 : index
    %c0_116 = arith.constant 0 : index
    %232 = vector.load %arg2[%c16_114, %c0_115, %c0_116] : memref<24x1x128xf32, #tpu.memory_space<vmem>>, vector<1x1x128xf32>
    %233 = vector.shape_cast %232 : vector<1x1x128xf32> to vector<1x128xf32>
    %cst_117 = arith.constant 0.899999976 : f32
    %234 = vector.broadcast %cst_117 : f32 to vector<1x128xf32>
    %235 = arith.mulf %233, %234 : vector<1x128xf32>
    %cst_118 = arith.constant 5.000000e-02 : f32
    %236 = vector.broadcast %cst_118 : f32 to vector<1x128xf32>
    %237 = arith.addf %235, %236 : vector<1x128xf32>
    %238 = arith.subf %231, %237 : vector<1x128xf32>
    %239 = arith.mulf %238, %238 : vector<1x128xf32>
    %240 = arith.addf %229, %239 : vector<1x128xf32>
    %c17 = arith.constant 17 : index
    %c0_119 = arith.constant 0 : index
    %c0_120 = arith.constant 0 : index
    %241 = vector.load %arg1[%c17, %c0_119, %c0_120] : memref<24x1x128xf32, #tpu.memory_space<vmem>>, vector<1x1x128xf32>
    %242 = vector.shape_cast %241 : vector<1x1x128xf32> to vector<1x128xf32>
    %c17_121 = arith.constant 17 : index
    %c0_122 = arith.constant 0 : index
    %c0_123 = arith.constant 0 : index
    %243 = vector.load %arg2[%c17_121, %c0_122, %c0_123] : memref<24x1x128xf32, #tpu.memory_space<vmem>>, vector<1x1x128xf32>
    %244 = vector.shape_cast %243 : vector<1x1x128xf32> to vector<1x128xf32>
    %cst_124 = arith.constant 0.899999976 : f32
    %245 = vector.broadcast %cst_124 : f32 to vector<1x128xf32>
    %246 = arith.mulf %244, %245 : vector<1x128xf32>
    %cst_125 = arith.constant 5.000000e-02 : f32
    %247 = vector.broadcast %cst_125 : f32 to vector<1x128xf32>
    %248 = arith.addf %246, %247 : vector<1x128xf32>
    %249 = arith.subf %242, %248 : vector<1x128xf32>
    %250 = arith.mulf %249, %249 : vector<1x128xf32>
    %251 = arith.addf %240, %250 : vector<1x128xf32>
    %c18 = arith.constant 18 : index
    %c0_126 = arith.constant 0 : index
    %c0_127 = arith.constant 0 : index
    %252 = vector.load %arg1[%c18, %c0_126, %c0_127] : memref<24x1x128xf32, #tpu.memory_space<vmem>>, vector<1x1x128xf32>
    %253 = vector.shape_cast %252 : vector<1x1x128xf32> to vector<1x128xf32>
    %c18_128 = arith.constant 18 : index
    %c0_129 = arith.constant 0 : index
    %c0_130 = arith.constant 0 : index
    %254 = vector.load %arg2[%c18_128, %c0_129, %c0_130] : memref<24x1x128xf32, #tpu.memory_space<vmem>>, vector<1x1x128xf32>
    %255 = vector.shape_cast %254 : vector<1x1x128xf32> to vector<1x128xf32>
    %cst_131 = arith.constant 0.899999976 : f32
    %256 = vector.broadcast %cst_131 : f32 to vector<1x128xf32>
    %257 = arith.mulf %255, %256 : vector<1x128xf32>
    %cst_132 = arith.constant 5.000000e-02 : f32
    %258 = vector.broadcast %cst_132 : f32 to vector<1x128xf32>
    %259 = arith.addf %257, %258 : vector<1x128xf32>
    %260 = arith.subf %253, %259 : vector<1x128xf32>
    %261 = arith.mulf %260, %260 : vector<1x128xf32>
    %262 = arith.addf %251, %261 : vector<1x128xf32>
    %c19 = arith.constant 19 : index
    %c0_133 = arith.constant 0 : index
    %c0_134 = arith.constant 0 : index
    %263 = vector.load %arg1[%c19, %c0_133, %c0_134] : memref<24x1x128xf32, #tpu.memory_space<vmem>>, vector<1x1x128xf32>
    %264 = vector.shape_cast %263 : vector<1x1x128xf32> to vector<1x128xf32>
    %c19_135 = arith.constant 19 : index
    %c0_136 = arith.constant 0 : index
    %c0_137 = arith.constant 0 : index
    %265 = vector.load %arg2[%c19_135, %c0_136, %c0_137] : memref<24x1x128xf32, #tpu.memory_space<vmem>>, vector<1x1x128xf32>
    %266 = vector.shape_cast %265 : vector<1x1x128xf32> to vector<1x128xf32>
    %cst_138 = arith.constant 0.899999976 : f32
    %267 = vector.broadcast %cst_138 : f32 to vector<1x128xf32>
    %268 = arith.mulf %266, %267 : vector<1x128xf32>
    %cst_139 = arith.constant 5.000000e-02 : f32
    %269 = vector.broadcast %cst_139 : f32 to vector<1x128xf32>
    %270 = arith.addf %268, %269 : vector<1x128xf32>
    %271 = arith.subf %264, %270 : vector<1x128xf32>
    %272 = arith.mulf %271, %271 : vector<1x128xf32>
    %273 = arith.addf %262, %272 : vector<1x128xf32>
    %c20 = arith.constant 20 : index
    %c0_140 = arith.constant 0 : index
    %c0_141 = arith.constant 0 : index
    %274 = vector.load %arg1[%c20, %c0_140, %c0_141] : memref<24x1x128xf32, #tpu.memory_space<vmem>>, vector<1x1x128xf32>
    %275 = vector.shape_cast %274 : vector<1x1x128xf32> to vector<1x128xf32>
    %c20_142 = arith.constant 20 : index
    %c0_143 = arith.constant 0 : index
    %c0_144 = arith.constant 0 : index
    %276 = vector.load %arg2[%c20_142, %c0_143, %c0_144] : memref<24x1x128xf32, #tpu.memory_space<vmem>>, vector<1x1x128xf32>
    %277 = vector.shape_cast %276 : vector<1x1x128xf32> to vector<1x128xf32>
    %cst_145 = arith.constant 0.899999976 : f32
    %278 = vector.broadcast %cst_145 : f32 to vector<1x128xf32>
    %279 = arith.mulf %277, %278 : vector<1x128xf32>
    %cst_146 = arith.constant 5.000000e-02 : f32
    %280 = vector.broadcast %cst_146 : f32 to vector<1x128xf32>
    %281 = arith.addf %279, %280 : vector<1x128xf32>
    %282 = arith.subf %275, %281 : vector<1x128xf32>
    %283 = arith.mulf %282, %282 : vector<1x128xf32>
    %284 = arith.addf %273, %283 : vector<1x128xf32>
    %c21 = arith.constant 21 : index
    %c0_147 = arith.constant 0 : index
    %c0_148 = arith.constant 0 : index
    %285 = vector.load %arg1[%c21, %c0_147, %c0_148] : memref<24x1x128xf32, #tpu.memory_space<vmem>>, vector<1x1x128xf32>
    %286 = vector.shape_cast %285 : vector<1x1x128xf32> to vector<1x128xf32>
    %c21_149 = arith.constant 21 : index
    %c0_150 = arith.constant 0 : index
    %c0_151 = arith.constant 0 : index
    %287 = vector.load %arg2[%c21_149, %c0_150, %c0_151] : memref<24x1x128xf32, #tpu.memory_space<vmem>>, vector<1x1x128xf32>
    %288 = vector.shape_cast %287 : vector<1x1x128xf32> to vector<1x128xf32>
    %cst_152 = arith.constant 0.899999976 : f32
    %289 = vector.broadcast %cst_152 : f32 to vector<1x128xf32>
    %290 = arith.mulf %288, %289 : vector<1x128xf32>
    %cst_153 = arith.constant 5.000000e-02 : f32
    %291 = vector.broadcast %cst_153 : f32 to vector<1x128xf32>
    %292 = arith.addf %290, %291 : vector<1x128xf32>
    %293 = arith.subf %286, %292 : vector<1x128xf32>
    %294 = arith.mulf %293, %293 : vector<1x128xf32>
    %295 = arith.addf %284, %294 : vector<1x128xf32>
    %c22 = arith.constant 22 : index
    %c0_154 = arith.constant 0 : index
    %c0_155 = arith.constant 0 : index
    %296 = vector.load %arg1[%c22, %c0_154, %c0_155] : memref<24x1x128xf32, #tpu.memory_space<vmem>>, vector<1x1x128xf32>
    %297 = vector.shape_cast %296 : vector<1x1x128xf32> to vector<1x128xf32>
    %c22_156 = arith.constant 22 : index
    %c0_157 = arith.constant 0 : index
    %c0_158 = arith.constant 0 : index
    %298 = vector.load %arg2[%c22_156, %c0_157, %c0_158] : memref<24x1x128xf32, #tpu.memory_space<vmem>>, vector<1x1x128xf32>
    %299 = vector.shape_cast %298 : vector<1x1x128xf32> to vector<1x128xf32>
    %cst_159 = arith.constant 0.899999976 : f32
    %300 = vector.broadcast %cst_159 : f32 to vector<1x128xf32>
    %301 = arith.mulf %299, %300 : vector<1x128xf32>
    %cst_160 = arith.constant 5.000000e-02 : f32
    %302 = vector.broadcast %cst_160 : f32 to vector<1x128xf32>
    %303 = arith.addf %301, %302 : vector<1x128xf32>
    %304 = arith.subf %297, %303 : vector<1x128xf32>
    %305 = arith.mulf %304, %304 : vector<1x128xf32>
    %306 = arith.addf %295, %305 : vector<1x128xf32>
    %c23 = arith.constant 23 : index
    %c0_161 = arith.constant 0 : index
    %c0_162 = arith.constant 0 : index
    %307 = vector.load %arg1[%c23, %c0_161, %c0_162] : memref<24x1x128xf32, #tpu.memory_space<vmem>>, vector<1x1x128xf32>
    %308 = vector.shape_cast %307 : vector<1x1x128xf32> to vector<1x128xf32>
    %c23_163 = arith.constant 23 : index
    %c0_164 = arith.constant 0 : index
    %c0_165 = arith.constant 0 : index
    %309 = vector.load %arg2[%c23_163, %c0_164, %c0_165] : memref<24x1x128xf32, #tpu.memory_space<vmem>>, vector<1x1x128xf32>
    %310 = vector.shape_cast %309 : vector<1x1x128xf32> to vector<1x128xf32>
    %cst_166 = arith.constant 0.899999976 : f32
    %311 = vector.broadcast %cst_166 : f32 to vector<1x128xf32>
    %312 = arith.mulf %310, %311 : vector<1x128xf32>
    %cst_167 = arith.constant 5.000000e-02 : f32
    %313 = vector.broadcast %cst_167 : f32 to vector<1x128xf32>
    %314 = arith.addf %312, %313 : vector<1x128xf32>
    %315 = arith.subf %308, %314 : vector<1x128xf32>
    %316 = arith.mulf %315, %315 : vector<1x128xf32>
    %317 = arith.addf %306, %316 : vector<1x128xf32>
    %318 = arith.select %42, %317, %40 : vector<1x128xi1>, vector<1x128xf32>
    %319 = arith.extui %42 : vector<1x128xi1> to vector<1x128xi32>
    %320 = arith.sitofp %319 : vector<1x128xi32> to vector<1x128xf32>
    %cst_168 = arith.constant dense<0.000000e+00> : vector<128xf32>
    %321 = vector.multi_reduction <add>, %320, %cst_168 [0] : vector<1x128xf32> to vector<128xf32>
    %322 = vector.shape_cast %321 : vector<128xf32> to vector<1x128xf32>
    %c0_169 = arith.constant 0 : index
    %c0_170 = arith.constant 0 : index
    %c0_171 = arith.constant 0 : index
    %323 = vector.load %arg3[%c0_169, %c0_170, %c0_171] : memref<1x8x128xf32, #tpu.memory_space<vmem>>, vector<1x1x128xf32>
    %324 = vector.shape_cast %323 : vector<1x1x128xf32> to vector<1x128xf32>
    %325 = vector.shape_cast %322 : vector<1x128xf32> to vector<1x1x128xf32>
    tpu.vector_store %arg3[%c0_169, %c0_170, %c0_171], %325 {strides = array<i32>} : memref<1x8x128xf32, #tpu.memory_space<vmem>>, vector<1x1x128xf32>,
    %326 = arith.extui %44 : vector<1x128xi1> to vector<1x128xi32>
    %327 = arith.sitofp %326 : vector<1x128xi32> to vector<1x128xf32>
    %cst_172 = arith.constant dense<0.000000e+00> : vector<128xf32>
    %328 = vector.multi_reduction <add>, %327, %cst_172 [0] : vector<1x128xf32> to vector<128xf32>
    %329 = vector.shape_cast %328 : vector<128xf32> to vector<1x128xf32>
    %c0_173 = arith.constant 0 : index
    %c1_174 = arith.constant 1 : index
    %c0_175 = arith.constant 0 : index
    %330 = vector.load %arg3[%c0_173, %c1_174, %c0_175] : memref<1x8x128xf32, #tpu.memory_space<vmem>>, vector<1x1x128xf32>
    %331 = vector.shape_cast %330 : vector<1x1x128xf32> to vector<1x128xf32>
    %332 = vector.shape_cast %329 : vector<1x128xf32> to vector<1x1x128xf32>
    tpu.vector_store %arg3[%c0_173, %c1_174, %c0_175], %332 {strides = array<i32>} : memref<1x8x128xf32, #tpu.memory_space<vmem>>, vector<1x1x128xf32>,
    %cst_176 = arith.constant dense<0.000000e+00> : vector<128xf32>
    %333 = vector.multi_reduction <add>, %50, %cst_176 [0] : vector<1x128xf32> to vector<128xf32>
    %334 = vector.shape_cast %333 : vector<128xf32> to vector<1x128xf32>
    %c0_177 = arith.constant 0 : index
    %c2_178 = arith.constant 2 : index
    %c0_179 = arith.constant 0 : index
    %335 = vector.load %arg3[%c0_177, %c2_178, %c0_179] : memref<1x8x128xf32, #tpu.memory_space<vmem>>, vector<1x1x128xf32>
    %336 = vector.shape_cast %335 : vector<1x1x128xf32> to vector<1x128xf32>
    %337 = vector.shape_cast %334 : vector<1x128xf32> to vector<1x1x128xf32>
    tpu.vector_store %arg3[%c0_177, %c2_178, %c0_179], %337 {strides = array<i32>} : memref<1x8x128xf32, #tpu.memory_space<vmem>>, vector<1x1x128xf32>,
    %cst_180 = arith.constant dense<0.000000e+00> : vector<128xf32>
    %338 = vector.multi_reduction <add>, %149, %cst_180 [0] : vector<1x128xf32> to vector<128xf32>
    %339 = vector.shape_cast %338 : vector<128xf32> to vector<1x128xf32>
    %c0_181 = arith.constant 0 : index
    %c3_182 = arith.constant 3 : index
    %c0_183 = arith.constant 0 : index
    %340 = vector.load %arg3[%c0_181, %c3_182, %c0_183] : memref<1x8x128xf32, #tpu.memory_space<vmem>>, vector<1x1x128xf32>
    %341 = vector.shape_cast %340 : vector<1x1x128xf32> to vector<1x128xf32>
    %342 = vector.shape_cast %339 : vector<1x128xf32> to vector<1x1x128xf32>
    tpu.vector_store %arg3[%c0_181, %c3_182, %c0_183], %342 {strides = array<i32>} : memref<1x8x128xf32, #tpu.memory_space<vmem>>, vector<1x1x128xf32>,
    %cst_184 = arith.constant dense<0.000000e+00> : vector<128xf32>
    %343 = vector.multi_reduction <add>, %155, %cst_184 [0] : vector<1x128xf32> to vector<128xf32>
    %344 = vector.shape_cast %343 : vector<128xf32> to vector<1x128xf32>
    %c0_185 = arith.constant 0 : index
    %c4_186 = arith.constant 4 : index
    %c0_187 = arith.constant 0 : index
    %345 = vector.load %arg3[%c0_185, %c4_186, %c0_187] : memref<1x8x128xf32, #tpu.memory_space<vmem>>, vector<1x1x128xf32>
    %346 = vector.shape_cast %345 : vector<1x1x128xf32> to vector<1x128xf32>
    %347 = vector.shape_cast %344 : vector<1x128xf32> to vector<1x1x128xf32>
    tpu.vector_store %arg3[%c0_185, %c4_186, %c0_187], %347 {strides = array<i32>} : memref<1x8x128xf32, #tpu.memory_space<vmem>>, vector<1x1x128xf32>,
    %cst_188 = arith.constant dense<0.000000e+00> : vector<128xf32>
    %348 = vector.multi_reduction <add>, %161, %cst_188 [0] : vector<1x128xf32> to vector<128xf32>
    %349 = vector.shape_cast %348 : vector<128xf32> to vector<1x128xf32>
    %c0_189 = arith.constant 0 : index
    %c5_190 = arith.constant 5 : index
    %c0_191 = arith.constant 0 : index
    %350 = vector.load %arg3[%c0_189, %c5_190, %c0_191] : memref<1x8x128xf32, #tpu.memory_space<vmem>>, vector<1x1x128xf32>
    %351 = vector.shape_cast %350 : vector<1x1x128xf32> to vector<1x128xf32>
    %352 = vector.shape_cast %349 : vector<1x128xf32> to vector<1x1x128xf32>
    tpu.vector_store %arg3[%c0_189, %c5_190, %c0_191], %352 {strides = array<i32>} : memref<1x8x128xf32, #tpu.memory_space<vmem>>, vector<1x1x128xf32>,
    %cst_192 = arith.constant dense<0.000000e+00> : vector<128xf32>
    %353 = vector.multi_reduction <add>, %163, %cst_192 [0] : vector<1x128xf32> to vector<128xf32>
    %354 = vector.shape_cast %353 : vector<128xf32> to vector<1x128xf32>
    %c0_193 = arith.constant 0 : index
    %c6_194 = arith.constant 6 : index
    %c0_195 = arith.constant 0 : index
    %355 = vector.load %arg3[%c0_193, %c6_194, %c0_195] : memref<1x8x128xf32, #tpu.memory_space<vmem>>, vector<1x1x128xf32>
    %356 = vector.shape_cast %355 : vector<1x1x128xf32> to vector<1x128xf32>
    %357 = vector.shape_cast %354 : vector<1x128xf32> to vector<1x1x128xf32>
    tpu.vector_store %arg3[%c0_193, %c6_194, %c0_195], %357 {strides = array<i32>} : memref<1x8x128xf32, #tpu.memory_space<vmem>>, vector<1x1x128xf32>,
    %cst_196 = arith.constant dense<0.000000e+00> : vector<128xf32>
    %358 = vector.multi_reduction <add>, %318, %cst_196 [0] : vector<1x128xf32> to vector<128xf32>
    %359 = vector.shape_cast %358 : vector<128xf32> to vector<1x128xf32>
    %c0_197 = arith.constant 0 : index
    %c7_198 = arith.constant 7 : index
    %c0_199 = arith.constant 0 : index
    %360 = vector.load %arg3[%c0_197, %c7_198, %c0_199] : memref<1x8x128xf32, #tpu.memory_space<vmem>>, vector<1x1x128xf32>
    %361 = vector.shape_cast %360 : vector<1x1x128xf32> to vector<1x128xf32>
    %362 = vector.shape_cast %359 : vector<1x128xf32> to vector<1x1x128xf32>
    tpu.vector_store %arg3[%c0_197, %c7_198, %c0_199], %362 {strides = array<i32>} : memref<1x8x128xf32, #tpu.memory_space<vmem>>, vector<1x1x128xf32>,
    return
  }
  func.func @transform_0(%arg0: i32) -> (i32, i32, i32) {
    %c0_i32 = arith.constant 0 : i32
    %c0_i32_0 = arith.constant 0 : i32
    %c0_i32_1 = arith.constant 0 : i32
    return %c0_i32, %arg0, %c0_i32_0 : i32, i32, i32
  }
  func.func @transform_1(%arg0: i32) -> (i32, i32, i32) {
    %c0_i32 = arith.constant 0 : i32
    %c0_i32_0 = arith.constant 0 : i32
    %c0_i32_1 = arith.constant 0 : i32
    return %c0_i32, %arg0, %c0_i32_0 : i32, i32, i32
  }
  func.func @transform_2(%arg0: i32) -> (i32, i32, i32) {
    %c0_i32 = arith.constant 0 : i32
    %c0_i32_0 = arith.constant 0 : i32
    %c0_i32_1 = arith.constant 0 : i32
    return %arg0, %c0_i32, %c0_i32_0 : i32, i32, i32
  }
}

</mosaic_0001>

<bundles_post_ra>
// kernel: yolo_loss.1
= control target key start
LH: loop header
LB: loop body
LE: loop exit
PB: predicated region body
PF: predicated region fallthrough
CT: control target
= control target key end

     0   :  { %v353_v5 = vmov 0.0   ;;  %s656_s1 = inlined_call_operand.vmem [shape: f32[24,1,128], index: 1, kind: input, shape index: {}]   ;;  %s657_s0 = inlined_call_operand.vmem [shape: f32[24,1,128], index: 0, kind: input, shape index: {}]   ;;  %s658_s2 = inlined_call_operand.vmem [shape: f32[1,8,128], index: 2, kind: output, shape index: {}]  }
   0x1   :  { %v372_v0 = vld [vmem:[%s656_s1 + $0x4] sm:$0x1]  ;;  %v382_v2 = vld [vmem:[%s657_s0 + $0x9] sm:$0x1]  ;;  %v405_v10 = vld [vmem:[%s657_s0] sm:$0x1] }
   0x2   :  { %v377_v1 = vld [vmem:[%s657_s0 + $0x4] sm:$0x1]  ;;  %vm49_vm0 = vcmp.gt.f32.partialorder %v372_v0, 0.0  ;;  %vm50_vm1 = vcmp.eq.f32.partialorder %v372_v0, 0.0  ;;  %v317_v3 = vld [vmem:[%s656_s1 + $0x9] sm:$0x1] }
   0x3   :  { %v51_v4 = vsub.f32 %v377_v1, %v372_v0  ;;  %v346_v6 = vsel %vm49_vm0, 1.0, %v353_v5  ;;  %v347_v7 = vsel %vm50_vm1, 1.0, %v353_v5  ;;  %v52_v8 = vsub.f32 %v382_v2, %v317_v3  ;;  %v410_v11 = vld [vmem:[%s657_s0 + $0x1] sm:$0x1]  ;;  %v415_v13 = vld [vmem:[%s657_s0 + $0x2] sm:$0x1] }
   0x4   :  { %279 = vst [vmem:[%s658_s2] sm:$0x1] %v346_v6  ;;  %283 = vst [vmem:[%s658_s2 + $0x1] sm:$0x1] %v347_v7  ;;  %v420_v14 = vld [vmem:[%s657_s0 + $0x3] sm:$0x1]  ;;  %v67_v27 = vmul.f32 0.5, %v415_v13 }
   0x5   :  { %v53_v9 = vmul.f32 %v51_v4, %v51_v4  ;;  %v54_v12 = vmul.f32 %v52_v8, %v52_v8  ;;  %v425_v15 = vld [vmem:[%s656_s1] sm:$0x1]  ;;  %v430_v16 = vld [vmem:[%s657_s0 + $0x5] sm:$0x1]  ;;  %v435_v17 = vld [vmem:[%s656_s1 + $0x1] sm:$0x1] }
   0x6   :  { %v440_v18 = vld [vmem:[%s656_s1 + $0x2] sm:$0x1]  ;;  %v445_v19 = vld [vmem:[%s656_s1 + $0x3] sm:$0x1]  ;;  %v57_v21 = vmul.f32 0.071428575, %v425_v15 }
   0x7   :  { %v55_v20 = vadd.f32 %v54_v12, %v53_v9  ;;  %v58_v22 = vmul.f32 0.071428575, %v435_v17  ;;  %v59_v23 = vmul.f32 0.5, %v440_v18  ;;  %v60_v24 = vmul.f32 0.5, %v445_v19  ;;  %v463_v32 = vld [vmem:[%s657_s0 + $0x6] sm:$0x1] }
   0x8   :  { %v65_v25 = vmul.f32 0.071428575, %v405_v10  ;;  %v66_v26 = vmul.f32 0.071428575, %v410_v11  ;;  %v68_v31 = vmul.f32 0.5, %v420_v14 }
   0x9   :  { %v56_v28 = vsel %vm50_vm1, %v55_v20, 0.0  ;;  %v61_v29 = vsub.f32 %v57_v21, %v59_v23  ;;  %v63_v30 = vadd.f32 %v59_v23, %v57_v21  ;;  %v62_v33 = vsub.f32 %v58_v22, %v60_v24  ;;  %v468_v37 = vld [vmem:[%s657_s0 + $0x7] sm:$0x1]  ;;  %v473_v38 = vld [vmem:[%s657_s0 + $0x8] sm:$0x1] }
   0xa   :  { %285 = vst [vmem:[%s658_s2 + $0x2] sm:$0x1] %v56_v28  ;;  %v64_v34 = vadd.f32 %v60_v24, %v58_v22  ;;  %v69_v35 = vsub.f32 %v65_v25, %v67_v27  ;;  %v71_v36 = vadd.f32 %v67_v27, %v65_v25  ;;  %v70_v39 = vsub.f32 %v66_v26, %v68_v31  ;;  %v319_v47 = vld [vmem:[%s656_s1 + $0xa] sm:$0x1]  ;;  %v321_v48 = vld [vmem:[%s656_s1 + $0xb] sm:$0x1] }
   0xb   :  { %v72_v40 = vadd.f32 %v68_v31, %v66_v26  ;;  %v85_v41 = vsub.f32 %v63_v30, %v61_v29  ;;  %v94_v42 = vmul.f32 0.071428575, %v430_v16  ;;  %v95_v52 = vmul.f32 0.071428575, %v463_v32  ;;  %v318_v4 = vld [vmem:[%s657_s0 + $0xa] sm:$0x1] }
   0xc   :  { %v73_v43 = vmin.f32 %v71_v36, %v63_v30  ;;  %v74_v44 = vmax.f32 %v69_v35, %v61_v29  ;;  %v82_v45 = vsub.f32 %v71_v36, %v69_v35  ;;  %v86_v46 = vsub.f32 %v64_v34, %v62_v33  ;;  %v323_v5 = vld [vmem:[%s656_s1 + $0xc] sm:$0x1]  ;;  %v325_v12 = vld [vmem:[%s656_s1 + $0xd] sm:$0x1]  ;;  %v320_v24 = vld [vmem:[%s657_s0 + $0xb] sm:$0x1] }
   0xd   :  { %v77_v49 = vmin.f32 %v72_v40, %v64_v34  ;;  %v78_v50 = vmax.f32 %v70_v39, %v62_v33  ;;  %v83_v51 = vsub.f32 %v72_v40, %v70_v39  ;;  %v96_v55 = vmul.f32 0.5, %v468_v37  ;;  %v322_v31 = vld [vmem:[%s657_s0 + $0xc] sm:$0x1] }
   0xe   :  { %v75_v53 = vsub.f32 %v73_v43, %v74_v44  ;;  %v87_v54 = vmul.f32 %v86_v46, %v85_v41  ;;  %v97_v56 = vmul.f32 0.5, %v473_v38  ;;  %v153_v59 = vmul.f32 0.9, %v319_v47  ;;  %v329_v43 = vld [vmem:[%s656_s1 + $0xf] sm:$0x1] }
   0xf   :  { %v79_v57 = vsub.f32 %v77_v49, %v78_v50  ;;  %v84_v58 = vmul.f32 %v83_v51, %v82_v45  ;;  %v162_v60 = vmul.f32 0.9, %v321_v48  ;;  %v98_v62 = vsub.f32 %v94_v42, %v96_v55  ;;  %v331_v44 = vld [vmem:[%s656_s1 + $0x10] sm:$0x1]  ;;  %v333_v45 = vld [vmem:[%s656_s1 + $0x11] sm:$0x1] }
  0x10   :  { %v76_v61 = vmax.f32 %v75_v53, 0.0  ;;  %v99_v63 = vsub.f32 %v95_v52, %v97_v56  ;;  %v100_v3 = vadd.f32 %v96_v55, %v94_v42  ;;  %v101_v8 = vadd.f32 %v97_v56, %v95_v52  ;;  %v326_v52 = vld [vmem:[%s657_s0 + $0xe] sm:$0x1] }
  0x11   :  { %v80_v6 = vmax.f32 %v79_v57, 0.0  ;;  %v88_v7 = vadd.f32 %v87_v54, %v84_v58  ;;  %v154_v9 = vadd.f32 0.05, %v153_v59  ;;  %v103_v21 = vmax.f32 %v98_v62, %v61_v29  ;;  %v327_v29 = vld [vmem:[%s656_s1 + $0xe] sm:$0x1] }
  0x12   :  { %v102_v20 = vmin.f32 %v100_v3, %v63_v30  ;;  %v107_v22 = vmax.f32 %v99_v63, %v62_v33  ;;  %v111_v23 = vsub.f32 %v100_v3, %v98_v62  ;;  %v106_v26 = vmin.f32 %v101_v8, %v64_v34  ;;  %v324_v30 = vld [vmem:[%s657_s0 + $0xd] sm:$0x1]  ;;  %v328_v58 = vld [vmem:[%s657_s0 + $0xf] sm:$0x1]  ;;  %v335_v59 = vld [vmem:[%s656_s1 + $0x12] sm:$0x1] }
  0x13   :  { %v497_v25 = vmul.f32 %v80_v6, %v76_v61  ;;  %v112_v27 = vsub.f32 %v101_v8, %v99_v63  ;;  %v155_v28 = vsub.f32 %v318_v4, %v154_v9  ;;  %v163_v35 = vadd.f32 0.05, %v162_v60  ;;  %v332_v8 = vld [vmem:[%s657_s0 + $0x11] sm:$0x1] }
  0x14   :  { %v104_v33 = vsub.f32 %v102_v20, %v103_v21  ;;  %v171_v36 = vmul.f32 0.9, %v323_v5  ;;  %v180_v39 = vmul.f32 0.9, %v325_v12  ;;  %v108_v40 = vsub.f32 %v106_v26, %v107_v22 }
  0x15   :  { %v509_v34 = vsub.f32 %v88_v7, %v497_v25  ;;  %v113_v41 = vmul.f32 %v112_v27, %v111_v23  ;;  %v156_v42 = vmul.f32 %v155_v28, %v155_v28  ;;  %v164_v47 = vsub.f32 %v320_v24, %v163_v35  ;;  %v330_v7 = vld [vmem:[%s657_s0 + $0x10] sm:$0x1]  ;;  %v339_v27 = vld [vmem:[%s656_s1 + $0x14] sm:$0x1] }
  0x16   :  { %v105_v46 = vmax.f32 %v104_v33, 0.0  ;;  %v172_v48 = vadd.f32 0.05, %v171_v36  ;;  %v181_v49 = vadd.f32 0.05, %v180_v39  ;;  %v109_v50 = vmax.f32 %v108_v40, 0.0 }
  0x17   :  { %349 = vrcp.f32 %v509_v34  ;;  %v114_v51 = vadd.f32 %v113_v41, %v87_v54  ;;  %v165_v53 = vmul.f32 %v164_v47, %v164_v47  ;;  %v189_v57 = vmul.f32 0.9, %v327_v29  ;;  %v337_v54 = vld [vmem:[%s656_s1 + $0x13] sm:$0x1]  ;;  %v341_v29 = vld [vmem:[%s656_s1 + $0x15] sm:$0x1] }
  0x18   :  { %v173_v55 = vsub.f32 %v322_v31, %v172_v48  ;;  %v182_v56 = vsub.f32 %v324_v30, %v181_v49  ;;  %v533_v60 = vmul.f32 %v109_v50, %v105_v46  ;;  %v198_v61 = vmul.f32 0.9, %v329_v43  ;;  %v334_v30 = vld [vmem:[%s657_s0 + $0x12] sm:$0x1]  ;;  %v336_v40 = vld [vmem:[%s657_s0 + $0x13] sm:$0x1] }
  0x19   :  { %v207_v62 = vmul.f32 0.9, %v331_v44  ;;  %v216_v63 = vmul.f32 0.9, %v333_v45  ;;  %v166_v3 = vadd.f32 %v165_v53, %v156_v42  ;;  %v190_v6 = vadd.f32 0.05, %v189_v57 }
  0x1a   :  { %v174_v4 = vmul.f32 %v173_v55, %v173_v55  ;;  %v183_v5 = vmul.f32 %v182_v56, %v182_v56  ;;  %v542_v9 = vsub.f32 %v114_v51, %v533_v60  ;;  %v199_v12 = vadd.f32 0.05, %v198_v61  ;;  %v343_v41 = vld [vmem:[%s656_s1 + $0x16] sm:$0x1]  ;;  %v345_v45 = vld [vmem:[%s656_s1 + $0x17] sm:$0x1] }
  0x1b   :  { %v208_v20 = vadd.f32 0.05, %v207_v62  ;;  %v217_v21 = vadd.f32 0.05, %v216_v63  ;;  %v191_v23 = vsub.f32 %v326_v52, %v190_v6  ;;  %v225_v24 = vmul.f32 0.9, %v335_v59 }
  0x1c   :  { %v175_v22 = vadd.f32 %v174_v4, %v166_v3  ;;  %v234_v26 = vmul.f32 0.9, %v337_v54  ;;  %351 = vrcp.f32 %v542_v9  ;;  %v200_v28 = vsub.f32 %v328_v58, %v199_v12  ;;  %v338_v51 = vld [vmem:[%s657_s0 + $0x14] sm:$0x1]  ;;  %v340_v59 = vld [vmem:[%s657_s0 + $0x15] sm:$0x1] }
  0x1d   :  { %v209_v31 = vsub.f32 %v330_v7, %v208_v20  ;;  %v192_v35 = vmul.f32 %v191_v23, %v191_v23  ;;  %v218_v36 = vsub.f32 %v332_v8, %v217_v21  ;;  %v226_v39 = vadd.f32 0.05, %v225_v24  ;;  %v342_v7 = vld [vmem:[%s657_s0 + $0x16] sm:$0x1]  ;;  %v344_v20 = vld [vmem:[%s657_s0 + $0x17] sm:$0x1] }
  0x1e   :  { %v184_v33 = vadd.f32 %v183_v5, %v175_v22  ;;  %v201_v42 = vmul.f32 %v200_v28, %v200_v28  ;;  %v235_v43 = vadd.f32 0.05, %v234_v26  ;;  %v243_v44 = vmul.f32 0.9, %v339_v27 }
  0x1f   :  { %v210_v47 = vmul.f32 %v209_v31, %v209_v31  ;;  %v227_v48 = vsub.f32 %v334_v30, %v226_v39  ;;  %v252_v49 = vmul.f32 0.9, %v341_v29  ;;  %v219_v50 = vmul.f32 %v218_v36, %v218_v36  ;;  %v316_v39 = vld [vmem:[%s656_s1 + $0x8] sm:$0x1] }
  0x20   :  { %v193_v46 = vadd.f32 %v192_v35, %v184_v33  ;;  %v244_v52 = vadd.f32 0.05, %v243_v44  ;;  %v261_v53 = vmul.f32 0.9, %v343_v41  ;;  %v236_v56 = vsub.f32 %v336_v40, %v235_v43 }
  0x21   :  { %v253_v57 = vadd.f32 0.05, %v252_v49  ;;  %v270_v58 = vmul.f32 0.9, %v345_v45  ;;  %v228_v62 = vmul.f32 %v227_v48, %v227_v48  ;;  %vm90_vm2 = vcmp.gt.f32.partialorder %v509_v34, 0.0 }
  0x22   :  { %v202_v55 = vadd.f32 %v201_v42, %v193_v46  ;;  %v245_v63 = vsub.f32 %v338_v51, %v244_v52  ;;  %v262_v3 = vadd.f32 0.05, %v261_v53  ;;  %v237_v5 = vmul.f32 %v236_v56, %v236_v56  ;;  %v314_v34 = vld [vmem:[%s656_s1 + $0x6] sm:$0x1] }
  0x23   :  { %v254_v6 = vsub.f32 %v340_v59, %v253_v57  ;;  %v271_v8 = vadd.f32 0.05, %v270_v58  ;;  %vm116_vm3 = vcmp.gt.f32.partialorder %v542_v9, 0.0 }
  0x24   :  { %v350_v54 = vpop.eup %349  ;;  %v211_v61 = vadd.f32 %v210_v47, %v202_v55  ;;  %v246_v22 = vmul.f32 %v245_v63, %v245_v63  ;;  %v263_v23 = vsub.f32 %v342_v7, %v262_v3 }
  0x25   :  { %v92_v12 = vmul.f32 %v350_v54, %v497_v25  ;;  %v255_v27 = vmul.f32 %v254_v6, %v254_v6  ;;  %v272_v28 = vsub.f32 %v344_v20, %v271_v8  ;;  %v313_v25 = vld [vmem:[%s656_s1 + $0x5] sm:$0x1] }
  0x26   :  { %v220_v4 = vadd.f32 %v219_v50, %v211_v61  ;;  %v264_v35 = vmul.f32 %v263_v23, %v263_v23 }
  0x27   :  { %v93_v31 = vsel %vm90_vm2, %v92_v12, 0.0  ;;  %v273_v41 = vmul.f32 %v272_v28, %v272_v28 }
  0x28   :  { %v229_v21 = vadd.f32 %v228_v62, %v220_v4 }
  0x29   :  { %v352_v24 = vpop.eup %351 }
  0x2a   :  { %v238_v26 = vadd.f32 %v237_v5, %v229_v21  ;;  %v118_v30 = vmul.f32 %v352_v24, %v533_v60  ;;  %v315_v60 = vld [vmem:[%s656_s1 + $0x7] sm:$0x1] }
  0x2c   :  { %v247_v29 = vadd.f32 %v246_v22, %v238_v26  ;;  %v119_v33 = vsel %vm116_vm3, %v118_v30, 0.0 }
  0x2d   :  { %vm585_vm4 = vcmp.gt.f32.partialorder %v119_v33, %v93_v31  ;;  %v121_v9 = vmax.f32 %v93_v31, %v119_v33 }
  0x2e   :  { %v256_v40 = vadd.f32 %v255_v27, %v247_v29  ;;  %v126_v42 = vsel %vm585_vm4, %v382_v2, %v377_v1  ;;  %v122_v43 = vsel %vm585_vm4, %v430_v16, %v405_v10  ;;  %v123_v44 = vsel %vm585_vm4, %v463_v32, %v410_v11 }
  0x2f   :  { %v128_v45 = vsel %vm585_vm4, %v313_v25, %v425_v15  ;;  %v132_v46 = vsub.f32 %v126_v42, %v121_v9  ;;  %v129_v47 = vsel %vm585_vm4, %v314_v34, %v435_v17  ;;  %v124_v10 = vsel %vm585_vm4, %v468_v37, %v415_v13 }
  0x30   :  { %v135_v48 = vsub.f32 %v122_v43, %v128_v45  ;;  %v137_v16 = vsub.f32 %v123_v44, %v129_v47  ;;  %v125_v11 = vsel %vm585_vm4, %v473_v38, %v420_v14  ;;  %v130_v15 = vsel %vm585_vm4, %v315_v60, %v440_v18 }
  0x31   :  { %v131_v17 = vsel %vm585_vm4, %v316_v39, %v445_v19  ;;  %v133_v32 = vmul.f32 %v132_v46, %v132_v46  ;;  %v141_v50 = vsub.f32 %v124_v10, %v130_v15  ;;  %v127_v13 = vsel %vm585_vm4, %v377_v1, %v382_v2 }
  0x32   :  { %v136_v49 = vmul.f32 %v135_v48, %v135_v48  ;;  %v143_v51 = vsub.f32 %v125_v11, %v131_v17  ;;  %v138_v52 = vmul.f32 %v137_v16, %v137_v16  ;;  %v265_v37 = vadd.f32 %v264_v35, %v256_v40 }
  0x33   :  { %v134_v14 = vsel %vm49_vm0, %v133_v32, 0.0  ;;  %v142_v38 = vmul.f32 %v141_v50, %v141_v50  ;;  %v147_v53 = vmul.f32 %v127_v13, %v127_v13 }
  0x34   :  { %v144_v18 = vmul.f32 %v143_v51, %v143_v51  ;;  %287 = vst [vmem:[%s658_s2 + $0x3] sm:$0x1] %v134_v14  ;;  %v139_v19 = vadd.f32 %v138_v52, %v136_v49  ;;  %v274_v55 = vadd.f32 %v273_v41, %v265_v37 }
  0x35   :  { %v148_v57 = vsel %vm49_vm0, %v147_v53, 0.0 }
  0x36   :  { %v145_v56 = vadd.f32 %v144_v18, %v142_v38  ;;  %v140_v1 = vsel %vm49_vm0, %v139_v19, 0.0  ;;  %293 = vst [vmem:[%s658_s2 + $0x6] sm:$0x1] %v148_v57  ;;  %v275_v2 = vsel %vm49_vm0, %v274_v55, 0.0 }
  0x37   :  { %289 = vst [vmem:[%s658_s2 + $0x4] sm:$0x1] %v140_v1  ;;  %295 = vst [vmem:[%s658_s2 + $0x7] sm:$0x1] %v275_v2 }
  0x38   :  { %v146_v58 = vsel %vm49_vm0, %v145_v56, 0.0 }
  0x39   :  { %291 = vst [vmem:[%s658_s2 + $0x5] sm:$0x1] %v146_v58 }

</bundles_post_ra>
